<compile_context>
chip_gen: v6e
topology: v6e:2x2x1
jax: 0.10.0
libtpu: 0.0.40
codegen_flags: <defaults>
</compile_context>

<pallas_src>
import jax
import jax.numpy as jnp
from jax.experimental import pallas as pl
from jax.experimental.pallas import tpu as pltpu


LANE = 128  # output last dim padded to the TPU lane width -> lane-dense stores


# ----------------------------------------------------------------------------
# Fused Pallas kernel: per token-tile
#     t   = patches_tile @ We + be        (patch embedding, MXU, f32 acc)
#     out = t            @ Ws + bs        (1x1 conv of the segmentor, MXU)
# ----------------------------------------------------------------------------
def _fused_embed_seg_kernel(p_ref, we_ref, be_ref, ws_ref, bs_ref, o_ref, t_ref):
    # p_ref : (tm, K1)    bf16   patchified tokens (streamed tile)
    # we_ref: (K1, Ch)    bf16   patch-embed weight  (VMEM-resident)
    # be_ref: (1,  Ch)    f32    patch-embed bias
    # ws_ref: (Ch, Npad)  bf16   seg 1x1-conv weight, zero-padded to 128 lanes
    # bs_ref: (1,  Npad)  f32    seg 1x1-conv bias,   zero-padded
    # o_ref : (tm, Npad)  f32    per-token P*P logits (padded)
    # t_ref : (tm, Ch)    bf16   VMEM scratch for the intermediate tokens
    t = jnp.dot(p_ref[...], we_ref[...], preferred_element_type=jnp.float32)
    t_ref[...] = (t + be_ref[...]).astype(t_ref.dtype)
    o = jnp.dot(t_ref[...], ws_ref[...], preferred_element_type=jnp.float32)
    o_ref[...] = (o + bs_ref[...]).astype(o_ref.dtype)


def _pick_m_tile(m_rows: int) -> int:
    """Generation-aware M tile: ~1024 rows on 128 MiB-VMEM parts (v5e/v6e),
    ~512 rows on 64 MiB parts (v7x).  Small inputs use one full block."""
    try:
        vmem = getattr(pltpu.get_tpu_info(), "vmem_capacity_bytes", 64 << 20)
    except Exception:  # pragma: no cover - defensive on older runtimes
        vmem = 64 << 20
    tm = 1024 if vmem >= (100 << 20) else 512
    if m_rows <= tm:
        return m_rows  # single block == full dim: no (8,128) divisibility issue
    return tm          # multiple of 8 and 128


def fused_embed_seg(patches, embed_w, embed_b, seg_w, seg_b):
    """(M, K1) patch tokens -> (M, P*P) segmentation logits, fused on-chip."""
    M, K1 = patches.shape
    Ch = embed_w.shape[1]
    n_out = seg_w.shape[1]
    n_pad = max(LANE, ((n_out + LANE - 1) // LANE) * LANE)

    # one-time tiny zero-padding so the output store is lane-dense (>=128 wide)
    seg_w_p = jnp.zeros((Ch, n_pad), jnp.float32).at[:, :n_out].set(seg_w)
    seg_b_p = jnp.zeros((n_pad,), jnp.float32).at[:n_out].set(seg_b)

    tm = _pick_m_tile(M)
    grid_m = pl.cdiv(M, tm)

    out = pl.pallas_call(
        _fused_embed_seg_kernel,
        out_shape=jax.ShapeDtypeStruct((M, n_pad), jnp.float32),
        grid_spec=pltpu.PrefetchScalarGridSpec(
            num_scalar_prefetch=0,
            grid=(grid_m,),
            in_specs=[
                pl.BlockSpec((tm, K1), lambda i: (i, 0)),      # tokens stream
                pl.BlockSpec((K1, Ch), lambda i: (0, 0)),      # weights resident
                pl.BlockSpec((1, Ch), lambda i: (0, 0)),
                pl.BlockSpec((Ch, n_pad), lambda i: (0, 0)),
                pl.BlockSpec((1, n_pad), lambda i: (0, 0)),
            ],
            out_specs=pl.BlockSpec((tm, n_pad), lambda i: (i, 0)),
            scratch_shapes=[pltpu.VMEM((tm, Ch), jnp.bfloat16)],
        ),
        compiler_params=pltpu.CompilerParams(
            dimension_semantics=("parallel",),   # shard M across TCs on v7x
            vmem_limit_bytes=32 * 1024 * 1024,
        ),
    )(
        patches.astype(jnp.bfloat16),
        embed_w.astype(jnp.bfloat16),
        embed_b.reshape(1, Ch).astype(jnp.float32),
        seg_w_p.astype(jnp.bfloat16),
        seg_b_p.reshape(1, n_pad).astype(jnp.float32),
    )
    return out[:, :n_out]


# ----------------------------------------------------------------------------
# Segmentor.forward
# ----------------------------------------------------------------------------
def segmentor_forward(x_nchw, params, patch_size):
    P = patch_size
    B, C, H, W = x_nchw.shape
    Hp, Wp = H // P, W // P
    L = Hp * Wp

    # Patchify (layout plumbing).  Done in bf16 so the transpose pass moves
    # half the bytes.
    # TODO(synk): fold this gather into the fused kernel's in_spec index_map
    # over a (B, Hp) grid to avoid the extra HBM pass entirely.
    xb = x_nchw.astype(jnp.bfloat16)
    patches = xb.reshape(B, C, Hp, P, Wp, P).transpose(0, 2, 4, 1, 3, 5)
    patches = patches.reshape(B * L, C * P * P)

    # Encoder patch-embed + segmentor 1x1 conv, fused in one tiled Pallas call.
    # (The encoder's CLS token and classification head are dead code in
    #  Segmentor.forward: `_, f = encoder(x)` discards the logits and
    #  `f[:, 1:]` drops the CLS token, so they are elided.)
    out_tok = fused_embed_seg(patches, params["embed_w"], params["embed_b"],
                              params["seg_w_t"], params["seg_b"])  # (B*L, P*P)

    # PixelShuffle(P): (B, P*P, Hp, Wp) -> (B, 1, Hp*P, Wp*P)
    #   y[b, 0, h*P+i, w*P+j] = out_tok[b*L + h*Wp + w, i*P + j]
    y = out_tok.reshape(B, Hp, Wp, P, P).transpose(0, 1, 3, 2, 4)
    y = y.reshape(B, 1, Hp * P, Wp * P)
    return jnp.squeeze(y)  # matches PyTorch y.squeeze()


# ----------------------------------------------------------------------------
# Deterministic parameters (stand-in for the opaque PyTorch encoder/segmentor)
# ----------------------------------------------------------------------------
def make_params(key, in_chans, patch_size, hidden_dim):
    P = patch_size
    k = jax.random.split(key, 4)
    patch_dim = in_chans * P * P
    return {
        "embed_w": 0.05 * jax.random.normal(k[0], (patch_dim, hidden_dim), jnp.float32),
        "embed_b": 0.01 * jax.random.normal(k[1], (hidden_dim,), jnp.float32),
        # nn.Conv2d(hidden_dim, P*P, kernel_size=1): weight (P*P, hidden, 1, 1),
        # stored transposed as (hidden, P*P) for the per-token matmul.
        "seg_w_t": 0.05 * jax.random.normal(k[2], (hidden_dim, P * P), jnp.float32),
        "seg_b":   0.01 * jax.random.normal(k[3], (P * P,), jnp.float32),
    }


# ----------------------------------------------------------------------------
# Pure-jnp reference that mirrors the kernel's bf16-input / f32-accumulate math
# ----------------------------------------------------------------------------
def _reference(x_nchw, params, P):
    B, C, H, W = x_nchw.shape
    Hp, Wp = H // P, W // P
    L = Hp * Wp
    xb = x_nchw.astype(jnp.bfloat16)
    patches = xb.reshape(B, C, Hp, P, Wp, P).transpose(0, 2, 4, 1, 3, 5)
    patches = patches.reshape(B * L, C * P * P)
    t = jnp.dot(patches, params["embed_w"].astype(jnp.bfloat16),
                preferred_element_type=jnp.float32) + params["embed_b"]
    t = t.astype(jnp.bfloat16)
    out = jnp.dot(t, params["seg_w_t"].astype(jnp.bfloat16),
                  preferred_element_type=jnp.float32) + params["seg_b"]
    y = out.reshape(B, Hp, Wp, P, P).transpose(0, 1, 3, 2, 4)
    return jnp.squeeze(y.reshape(B, 1, Hp * P, Wp * P))


if __name__ == "__main__":
    B, IN_CH, IMG = 2, 3, 16
    PATCH = 4
    HIDDEN = 32

    key = jax.random.PRNGKey(0)
    kx, kp = jax.random.split(key)
    x = jax.random.normal(kx, (B, IN_CH, IMG, IMG), jnp.float32)  # NCHW, like PyTorch
    params = make_params(kp, IN_CH, PATCH, HIDDEN)

    y = segmentor_forward(x, params, PATCH)
    y = jax.block_until_ready(y)

    assert y.shape == (B, IMG, IMG), y.shape  # (B, H*P, W*P) = (2, 16, 16)

    y_ref = _reference(x, params, PATCH)
    assert jnp.allclose(y, y_ref, atol=1e-2, rtol=1e-2), float(
        jnp.max(jnp.abs(y - y_ref)))

    print("KERNEL_OK")
</pallas_src>

<mosaic_0001>
module attributes {stable_mosaic.version = 11 : i64} {
  func.func @_fused_embed_seg_kernel(%arg0: i32, %arg1: memref<32x48xbf16, #tpu.memory_space<vmem>>, %arg2: memref<48x32xbf16, #tpu.memory_space<vmem>>, %arg3: memref<1x32xf32, #tpu.memory_space<vmem>>, %arg4: memref<32x128xbf16, #tpu.memory_space<vmem>>, %arg5: memref<1x128xf32, #tpu.memory_space<vmem>>, %arg6: memref<32x128xf32, #tpu.memory_space<vmem>>, %arg7: memref<32x32xbf16, #tpu.memory_space<vmem>>) attributes {dimension_semantics = [#tpu.dimension_semantics<parallel>], iteration_bounds = array<i64: 1>, scalar_prefetch = 0 : i64, scratch_operands = 1 : i64, tpu.core_type = #tpu.core_type<tc>, window_params = [{transform_indices = @transform_0, window_bounds = array<i64: 32, 48>}, {pipeline_mode = #tpu.pipeline_mode<synchronous>, transform_indices = @transform_1, window_bounds = array<i64: 48, 32>}, {pipeline_mode = #tpu.pipeline_mode<synchronous>, transform_indices = @transform_2, window_bounds = array<i64: 1, 32>}, {pipeline_mode = #tpu.pipeline_mode<synchronous>, transform_indices = @transform_3, window_bounds = array<i64: 32, 128>}, {pipeline_mode = #tpu.pipeline_mode<synchronous>, transform_indices = @transform_4, window_bounds = array<i64: 1, 128>}, {transform_indices = @transform_5, window_bounds = array<i64: 32, 128>}]} {
    %c0 = arith.constant 0 : index
    %c0_0 = arith.constant 0 : index
    %0 = vector.load %arg1[%c0, %c0_0] : memref<32x48xbf16, #tpu.memory_space<vmem>>, vector<32x48xbf16>
    %c0_1 = arith.constant 0 : index
    %c0_2 = arith.constant 0 : index
    %1 = vector.load %arg2[%c0_1, %c0_2] : memref<48x32xbf16, #tpu.memory_space<vmem>>, vector<48x32xbf16>
    %cst = arith.constant dense<0.000000e+00> : vector<32x32xf32>
    %2 = tpu.matmul %0, %1, %cst {dimension_numbers = #tpu.dot_dimension_numbers<[1], [0], [0], [1], [0, 0, 1, 1], [], []>} : vector<32x48xbf16>, vector<48x32xbf16>, vector<32x32xf32> -> vector<32x32xf32>
    %c0_3 = arith.constant 0 : index
    %c0_4 = arith.constant 0 : index
    %3 = vector.load %arg3[%c0_3, %c0_4] : memref<1x32xf32, #tpu.memory_space<vmem>>, vector<1x32xf32>
    %4 = vector.broadcast %3 : vector<1x32xf32> to vector<32x32xf32>
    %5 = arith.addf %2, %4 : vector<32x32xf32>
    %6 = arith.truncf %5 : vector<32x32xf32> to vector<32x32xbf16>
    %c0_5 = arith.constant 0 : index
    %c0_6 = arith.constant 0 : index
    %7 = vector.load %arg7[%c0_5, %c0_6] : memref<32x32xbf16, #tpu.memory_space<vmem>>, vector<32x32xbf16>
    tpu.vector_store %arg7[%c0_5, %c0_6], %6 {strides = array<i32>} : memref<32x32xbf16, #tpu.memory_space<vmem>>, vector<32x32xbf16>,
    %c0_7 = arith.constant 0 : index
    %c0_8 = arith.constant 0 : index
    %8 = vector.load %arg7[%c0_7, %c0_8] : memref<32x32xbf16, #tpu.memory_space<vmem>>, vector<32x32xbf16>
    %c0_9 = arith.constant 0 : index
    %c0_10 = arith.constant 0 : index
    %9 = vector.load %arg4[%c0_9, %c0_10] : memref<32x128xbf16, #tpu.memory_space<vmem>>, vector<32x128xbf16>
    %cst_11 = arith.constant dense<0.000000e+00> : vector<32x128xf32>
    %10 = tpu.matmul %8, %9, %cst_11 {dimension_numbers = #tpu.dot_dimension_numbers<[1], [0], [0], [1], [0, 0, 1, 1], [], []>} : vector<32x32xbf16>, vector<32x128xbf16>, vector<32x128xf32> -> vector<32x128xf32>
    %c0_12 = arith.constant 0 : index
    %c0_13 = arith.constant 0 : index
    %11 = vector.load %arg5[%c0_12, %c0_13] : memref<1x128xf32, #tpu.memory_space<vmem>>, vector<1x128xf32>
    %12 = vector.broadcast %11 : vector<1x128xf32> to vector<32x128xf32>
    %13 = arith.addf %10, %12 : vector<32x128xf32>
    %c0_14 = arith.constant 0 : index
    %c0_15 = arith.constant 0 : index
    %14 = vector.load %arg6[%c0_14, %c0_15] : memref<32x128xf32, #tpu.memory_space<vmem>>, vector<32x128xf32>
    tpu.vector_store %arg6[%c0_14, %c0_15], %13 {strides = array<i32>} : memref<32x128xf32, #tpu.memory_space<vmem>>, vector<32x128xf32>,
    return
  }
  func.func @transform_0(%arg0: i32) -> (i32, i32) {
    %c0_i32 = arith.constant 0 : i32
    %c0_i32_0 = arith.constant 0 : i32
    return %arg0, %c0_i32 : i32, i32
  }
  func.func @transform_1(%arg0: i32) -> (i32, i32) {
    %c0_i32 = arith.constant 0 : i32
    %c0_i32_0 = arith.constant 0 : i32
    %c0_i32_1 = arith.constant 0 : i32
    return %c0_i32, %c0_i32_0 : i32, i32
  }
  func.func @transform_2(%arg0: i32) -> (i32, i32) {
    %c0_i32 = arith.constant 0 : i32
    %c0_i32_0 = arith.constant 0 : i32
    %c0_i32_1 = arith.constant 0 : i32
    return %c0_i32, %c0_i32_0 : i32, i32
  }
  func.func @transform_3(%arg0: i32) -> (i32, i32) {
    %c0_i32 = arith.constant 0 : i32
    %c0_i32_0 = arith.constant 0 : i32
    %c0_i32_1 = arith.constant 0 : i32
    return %c0_i32, %c0_i32_0 : i32, i32
  }
  func.func @transform_4(%arg0: i32) -> (i32, i32) {
    %c0_i32 = arith.constant 0 : i32
    %c0_i32_0 = arith.constant 0 : i32
    %c0_i32_1 = arith.constant 0 : i32
    return %c0_i32, %c0_i32_0 : i32, i32
  }
  func.func @transform_5(%arg0: i32) -> (i32, i32) {
    %c0_i32 = arith.constant 0 : i32
    %c0_i32_0 = arith.constant 0 : i32
    return %arg0, %c0_i32 : i32, i32
  }
}

</mosaic_0001>

<bundles_post_ra>
// kernel: tpu_custom_call.1
= control target key start
LH: loop header
LB: loop body
LE: loop exit
PB: predicated region body
PF: predicated region fallthrough
CT: control target
= control target key end

     0   :  { %vm67_vm0 = vcmask 392192   ;;  %s404_s0 = inlined_call_operand.vmem [shape: bf16[32,48], index: 0, kind: input, shape index: {}]   ;;  %s405_s1 = inlined_call_operand.vmem [shape: bf16[48,32], index: 1, kind: input, shape index: {}]   ;;  %s406_s2 = inlined_call_operand.vmem [shape: f32[1,32], index: 2, kind: input, shape index: {}]   ;;  %s407_s3 = inlined_call_operand.vmem [shape: bf16[32,128], index: 3, kind: input, shape index: {}]   ;;  %s408_s4 = inlined_call_operand.vmem [shape: f32[1,128], index: 4, kind: input, shape index: {}]   ;;  %s409_s5 = inlined_call_operand.hbm [shape: f32[32,128], index: 5, kind: output, shape index: {}]  }
   0x1   :  { %v310_v0 = vld [vmem:[%s405_s1 + $0x10] sm:$0xff]   ;;  %v311_v1 = vld [vmem:[%s405_s1 + $0x8] sm:$0xff]   ;;  %v313_v2 = vld [vmem:[%s404_s0] sm:$0xff]  }
   0x2   :  { %289 = vmatprep.subr.bf16.mxu0 %v310_v0  ;;  %v312_v3 = vld [vmem:[%s405_s1] sm:$0xff]   ;;  %295 = vmatprep.mubr.msk.bf16.mxu0 %vm67_vm0, %v313_v2 }
   0x3   :  { %290 = vmatpush3.bf16.msra.mxu0 %v310_v0 }
   0x4   :  { %291 = vmatprep.subr.bf16.mxu0 %v311_v1 }
   0x5   :  { %10 = vsyncpa [#allocation4], 0  ;;  %v314_v4 = vld [vmem:[%s404_s0 + $0x8] sm:$0xff]   ;;  %v316_v6 = vld [vmem:[%s407_s3] sm:$0xff]   ;;  %vm139_vm1 = vcmask 257024   ;;  %vm181_vm2 = vcmask 261120  }
   0x6   :  { %v315_v5 = vld [vmem:[%s407_s3 + $0x8] sm:$0xff]   ;;  %v257_v7 = vld [vmem:[%s406_s2] ss:$0 sm:$0xff]  ;;  %s341_s3 = smov [#allocation3]  }
   0x7   :  { %292 = vmatpush3.bf16.msra.mxu0 %v311_v1  ;;  %299 = vmatprep.subr.bf16.mxu1 %v315_v5  ;;  %v269_v22 = vld [vmem:[%s408_s4] ss:$0 sm:$0xff]  ;;  %s246_s8 = sshll.u32 %s341_s3, 4  ;;  %s247_s8 = int_to_ptr.vmem [resolvable:$true] %s246_s8 }
   0x8   :  { %293 = vmatprep.subr.bf16.mxu0 %v312_v3  ;;  %300 = vmatpush3.bf16.msra.mxu1 %v315_v5  ;;  %s319_s9 = scalar_lea.vmem %s247_s8, 512  ;;  %p324_p1 = scmp.lt.s32.totalorder %s247_s8, %s247_s8 }
   0x9   :  { %301 = vmatprep.subr.bf16.mxu1 %v316_v6  ;;  %p320_p0 = scmp.ne.s32.totalorder %s247_s8, %s319_s9  ;;  %p325_p2 = scmp.lt.s32.totalorder %s319_s9, %s319_s9 }
   0xb   :  { %294 = vmatpush3.bf16.msra.mxu0 %v312_v3  ;;  %p326_p3 = por %p325_p2, %p324_p1 }
   0xc   :  { %302 = vmatpush3.bf16.msra.mxu1 %v316_v6 }
   0xd   :  { %p327_p4 = pnand %p326_p3, %p320_p0 }
   0xe   :  { %296 = vmatmul.mubr.msk.bf16.vlgmr.msra.gmra.mxu0 %vm67_vm0, %v314_v4 }
  0xce   :  { %v297_v8 = vpop.f32.mrf.mxu0 }
  0xcf   :  { %v117_v9 = vadd.f32 %v297_v8, %v257_v7 }
  0xd0   :  { %v108_v10 = vpop.f32.mrf.mxu0 }
  0xd1   :  { %v278_v11 = vpack.c.bf16 %v117_v9, %v117_v9  ;;  %v109_v12 = vadd.f32 %v257_v7, %v108_v10 }
  0xd2   :  { %v298_v13 = vpop.f32.mrf.mxu0 }
  0xd3   :  { %142 = vst.msk [vmem:[#allocation2 + $0x8] sm:$0xf] %vm139_vm1, %v278_v11  ;;  %v276_v14 = vpack.c.bf16 %v109_v12, %v109_v12  ;;  %v120_v15 = vadd.f32 %v298_v13, %v257_v7 }
  0xd4   :  { %v111_v16 = vpop.f32.mrf.mxu0 }
  0xd5   :  { %140 = vst.msk [vmem:[#allocation2] sm:$0xf] %vm139_vm1, %v276_v14  ;;  %v279_v17 = vpack.c.bf16 %v120_v15, %v120_v15  ;;  %v112_v18 = vadd.f32 %v257_v7, %v111_v16 }
  0xd7   :  { %143 = vst.msk [vmem:[#allocation2 + $0xc] sm:$0xf] %vm139_vm1, %v279_v17  ;;  %v277_v19 = vpack.c.bf16 %v112_v18, %v112_v18 }
  0xd9   :  { %141 = vst.msk [vmem:[#allocation2 + $0x4] sm:$0xf] %vm139_vm1, %v277_v19 }
  0xde   :  { %v318_v21 = vld [vmem:[#allocation2 + $0x8] sm:$0xff]  }
  0xe0   :  { %v317_v20 = vld [vmem:[#allocation2] sm:$0xff]  }
  0xe1   :  { %303 = vmatprep.mubr.msk.bf16.mxu1 %vm181_vm2, %v317_v20 }
  0xe2   :  { %304 = vmatmul.mubr.msk.bf16.vlgmr.msra.gmra.mxu1 %vm181_vm2, %v318_v21 }
 0x1a2   :  { %v305_v23 = vpop.f32.mrf.mxu1 }
 0x1a3   :  { %v231_v24 = vadd.f32 %v305_v23, %v269_v22 }
 0x1a4   :  { %v222_v25 = vpop.f32.mrf.mxu1 }
 0x1a5   :  { %239 = vst [vmem:[#allocation3 + $0x10] sm:$0xff] %v231_v24  ;;  %v223_v26 = vadd.f32 %v269_v22, %v222_v25 }
 0x1a6   :  { %v306_v27 = vpop.f32.mrf.mxu1 }
 0x1a7   :  { %237 = vst [vmem:[#allocation3] sm:$0xff] %v223_v26  ;;  %v234_v28 = vadd.f32 %v306_v27, %v269_v22 }
 0x1a8   :  { %v225_v29 = vpop.f32.mrf.mxu1 }
 0x1a9   :  { %240 = vst [vmem:[#allocation3 + $0x18] sm:$0xff] %v234_v28  ;;  %v226_v30 = vadd.f32 %v269_v22, %v225_v29 }
 0x1ab   :  { %238 = vst [vmem:[#allocation3 + $0x8] sm:$0xff] %v226_v30 }
 0x1ac   :  { %330 = shalt.err (!%p327_p4)
}
 0x1ad   :  { %s342_s4 = smov 128   ;;  %s343_s10 = smov 8  }
 0x1ae   :  { %252 = dma.vmem_to_hbm [thread:$0]  %s247_s8, 512, %s409_s5, [#allocation4], %s342_s4, %s342_s4, %s343_s10  }
 0x1af   :  { %339 = dma.done.wait [#allocation4], 512  }
 0x1b0   :  { %340 = vsyncadd [#allocation4], 4294966784 }
 0x1b1   :  { %256 = vsyncpa [#allocation4], 1 }

</bundles_post_ra>
